<compile_context>
chip_gen: v7x
topology: tpu7x:2x2x1
jax: 0.10.0
libtpu: 0.0.40
codegen_flags: <defaults>
</compile_context>

<pallas_src>
import functools
import math

import jax
import jax.numpy as jnp
from jax.experimental import pallas as pl
from jax.experimental.pallas import tpu as pltpu

LANE = 128


# ---------------------------------------------------------------------------
# small helpers
def _round_up(x, m):
    return ((x + m - 1) // m) * m


def _pad_axis(x, target, axis, value=0.0):
    pad = target - x.shape[axis]
    if pad <= 0:
        return x
    widths = [(0, 0)] * x.ndim
    widths[axis] = (0, pad)
    return jnp.pad(x, widths, constant_values=value)


def _vmem_capacity_bytes(default=64 * 1024 * 1024):
    try:
        return int(pltpu.get_tpu_info().vmem_capacity_bytes)
    except Exception:  # conservative (v7x-sized) fallback
        return default


# ---------------------------------------------------------------------------
# Fused small-graph kernel: aggregate + linear + ReLU + BatchNorm, all in VMEM.
def _gcn_fused_kernel(adj_ref, x_ref, wt_ref, b_ref, g_ref, bt_ref, o_ref, *,
                      eps, n_nodes):
    # Dominant matmul: bf16 operands straight from HBM-resident bf16, f32 accumulation.
    agg = jnp.dot(adj_ref[...], x_ref[...], preferred_element_type=jnp.float32)
    # Small linear: bf16 operands, f32 accumulation, then bias + ReLU.
    pre = jnp.dot(agg.astype(jnp.bfloat16), wt_ref[...],
                  preferred_element_type=jnp.float32) + b_ref[...]
    h = jnp.maximum(pre, 0.0)
    # Training-mode BatchNorm1d (biased batch variance).
    inv_n = 1.0 / n_nodes
    mean = jnp.sum(h, axis=0, keepdims=True) * inv_n
    centered = h - mean
    var = jnp.sum(centered * centered, axis=0, keepdims=True) * inv_n
    inv = jax.lax.rsqrt(var + eps)                       # EUP rsqrt
    o_ref[...] = centered * inv * g_ref[...] + bt_ref[...]


# ---------------------------------------------------------------------------
# Tiled kernel 1: weighted-adjacency aggregation + linear + ReLU (+ per-tile BN stats)
def _gcn_agg_linear_relu_kernel(adj_ref, x_ref, wt_ref, b_ref,
                                h_ref, stats_ref, acc_ref, *, tile_k, n_real):
    i = pl.program_id(0)
    k = pl.program_id(1)

    @pl.when(k == 0)
    def _():
        acc_ref[...] = jnp.zeros_like(acc_ref)
        stats_ref[...] = jnp.zeros_like(stats_ref)

    # Feature matrix is VMEM-resident; slice the reduction block in-kernel.
    start = pl.multiple_of(k * tile_k, tile_k)
    x_blk = x_ref[pl.ds(start, tile_k), :]               # (tk, in_p) bf16
    acc_ref[...] += jnp.dot(adj_ref[...], x_blk, preferred_element_type=jnp.float32)

    @pl.when(k == pl.num_programs(1) - 1)
    def _():
        # Epilogue: small linear (bf16 operands, f32 acc) + bias + ReLU.
        pre = jnp.dot(acc_ref[...].astype(jnp.bfloat16), wt_ref[...],
                      preferred_element_type=jnp.float32) + b_ref[...]
        h = jnp.maximum(pre, 0.0)
        h_ref[...] = h
        # Per-dst-tile BatchNorm statistics; rows past n_real (padding) are masked out.
        tn = h.shape[0]
        row = jax.lax.broadcasted_iota(jnp.int32, (tn, 1), 0) + i * tn
        hm = jnp.where(row < n_real, h, 0.0)
        stats_ref[0:1, :] = jnp.sum(hm, axis=0, keepdims=True)        # sum
        stats_ref[1:2, :] = jnp.sum(hm * hm, axis=0, keepdims=True)   # sum of squares


# ---------------------------------------------------------------------------
# Tiled kernel 2: apply pre-combined BatchNorm affine (out = h * scale + shift)
def _bn_apply_kernel(h_ref, scale_ref, shift_ref, o_ref):
    o_ref[...] = h_ref[...] * scale_ref[...] + shift_ref[...]


# ---------------------------------------------------------------------------
def gcn_layer(adj, feature, weight, bias, gamma, beta, *, eps=1e-5,
              tile_n=512, tile_k=512, fused_vmem_budget=24 * 1024 * 1024,
              force_tiled=False):
    """out = BatchNorm1d(ReLU(Linear(adj @ feature)))   (training-mode BN)."""
    N, in_dim = feature.shape
    out_dim = weight.shape[0]

    cap = _vmem_capacity_bytes()
    vmem_limit = int(min(48 * 1024 * 1024, max(32 * 1024 * 1024, cap // 2)))
    fused_budget = min(fused_vmem_budget, vmem_limit // 2)

    # Lane-dense channel padding (padded channels are zero and sliced off at the end).
    in_p = _round_up(in_dim, LANE)
    out_p = _round_up(out_dim, LANE)

    adj_bf16 = adj.astype(jnp.bfloat16)                                  # (N, N)
    x = _pad_axis(feature.astype(jnp.bfloat16), in_p, 1)                 # (N, in_p)
    w_t = _pad_axis(_pad_axis(weight.astype(jnp.float32).T, in_p, 0),
                    out_p, 1).astype(jnp.bfloat16)                       # (in_p, out_p)
    b2 = _pad_axis(bias.astype(jnp.float32).reshape(1, out_dim), out_p, 1)
    g2 = _pad_axis(gamma.astype(jnp.float32).reshape(1, out_dim), out_p, 1, value=1.0)
    bt2 = _pad_axis(beta.astype(jnp.float32).reshape(1, out_dim), out_p, 1)

    # ---------------- fused small-graph fast path ----------------
    fused_bytes = (N * N * 2 + N * in_p * 2 + in_p * out_p * 2 + 3 * out_p * 4
                   + N * out_p * 4                    # output
                   + N * in_p * 4 + 2 * N * out_p * 4)  # f32 intermediates
    if (not force_tiled) and fused_bytes <= fused_budget:
        vmem = pl.BlockSpec(memory_space=pltpu.MemorySpace.VMEM)
        out = pl.pallas_call(
            functools.partial(_gcn_fused_kernel, eps=eps, n_nodes=N),
            out_shape=jax.ShapeDtypeStruct((N, out_p), jnp.float32),
            in_specs=[vmem] * 6,
            out_specs=vmem,
            compiler_params=pltpu.CompilerParams(vmem_limit_bytes=vmem_limit),
        )(adj_bf16, x, w_t, b2, g2, bt2)
        return out[:, :out_dim]

    # ---------------- tiled / pipelined path ----------------
    # Tile sizes honouring the (8, 128) layout rule.
    tn = min(tile_n, _round_up(N, 8))
    tn = max(8, (tn // 8) * 8)
    tk = min(tile_k, _round_up(N, LANE))
    tk = max(LANE, (tk // LANE) * LANE)
    n_pad = _round_up(N, math.lcm(tn, tk))
    if n_pad // tn < 2 and tn % 16 == 0:
        tn //= 2                      # keep both v7x TensorCores busy when possible
    num_i = n_pad // tn
    num_k = n_pad // tk

    adj_p = _pad_axis(_pad_axis(adj_bf16, n_pad, 0), n_pad, 1)           # (n_pad, n_pad)
    x_p = _pad_axis(x, n_pad, 0)                                         # (n_pad, in_p)

    h, stats = pl.pallas_call(
        functools.partial(_gcn_agg_linear_relu_kernel, tile_k=tk, n_real=N),
        out_shape=(jax.ShapeDtypeStruct((n_pad, out_p), jnp.float32),
                   jax.ShapeDtypeStruct((num_i * 8, out_p), jnp.float32)),
        grid=(num_i, num_k),          # (dst tiles, src reduction tiles); reduction last
        in_specs=[
            pl.BlockSpec((tn, tk), lambda i, k: (i, k)),          # adjacency (bf16, streamed)
            pl.BlockSpec((n_pad, in_p), lambda i, k: (0, 0)),     # feature (bf16, resident)
            pl.BlockSpec((in_p, out_p), lambda i, k: (0, 0)),     # W^T (bf16, resident)
            pl.BlockSpec((1, out_p), lambda i, k: (0, 0)),        # bias (resident)
        ],
        out_specs=(pl.BlockSpec((tn, out_p), lambda i, k: (i, 0)),
                   pl.BlockSpec((8, out_p), lambda i, k: (i, 0))),
        scratch_shapes=[pltpu.VMEM((tn, in_p), jnp.float32)],
        compiler_params=pltpu.CompilerParams(
            dimension_semantics=("parallel", "arbitrary"),
            vmem_limit_bytes=vmem_limit,
        ),
    )(adj_p, x_p, w_t, b2)

    # Combine the tiny per-tile statistics (num_i x out_p) with XLA, fold gamma/beta.
    stats = stats.reshape(num_i, 8, out_p)
    total = jnp.sum(stats[:, 0, :], axis=0)                # (out_p,)  sum
    total_sq = jnp.sum(stats[:, 1, :], axis=0)             # (out_p,)  sum of squares
    mean = total / N
    var = jnp.maximum(total_sq / N - mean * mean, 0.0)     # biased (train-mode BN)
    inv = jax.lax.rsqrt(var + eps)
    scale = (inv * g2[0]).reshape(1, out_p)
    shift = (bt2[0] - mean * inv * g2[0]).reshape(1, out_p)

    out = pl.pallas_call(
        _bn_apply_kernel,
        out_shape=jax.ShapeDtypeStruct((n_pad, out_p), jnp.float32),
        grid=(num_i,),
        in_specs=[
            pl.BlockSpec((tn, out_p), lambda i: (i, 0)),
            pl.BlockSpec((1, out_p), lambda i: (0, 0)),
            pl.BlockSpec((1, out_p), lambda i: (0, 0)),
        ],
        out_specs=pl.BlockSpec((tn, out_p), lambda i: (i, 0)),
        compiler_params=pltpu.CompilerParams(
            dimension_semantics=("parallel",),
            vmem_limit_bytes=vmem_limit,
        ),
    )(h, scale, shift)
    return out[:N, :out_dim]


# ---------------------------------------------------------------------------
# graph glue + pure-JAX reference (mirrors the PyTorch forward exactly)
def build_weighted_adjacency(num_nodes, src, dst, edge_weight):
    # A_w[v, u] = sum of weights of edges u -> v  (DGL message w * h_src, sum reduce)
    adj = jnp.zeros((num_nodes, num_nodes), jnp.float32)
    return adj.at[dst, src].add(edge_weight)


def reference(adj, feature, weight, bias, gamma, beta, eps=1e-5):
    agg = adj @ feature
    h = jnp.maximum(agg @ weight.T + bias, 0.0)
    mean = jnp.mean(h, axis=0)
    var = jnp.mean((h - mean) ** 2, axis=0)      # biased var == train-mode BN
    return (h - mean) * jax.lax.rsqrt(var + eps) * gamma + beta


if __name__ == "__main__":
    N, E, IN_DIM, OUT_DIM = 256, 2048, 32, 32
    keys = jax.random.split(jax.random.PRNGKey(0), 8)

    feature = jax.random.normal(keys[0], (N, IN_DIM), jnp.float32)
    src = jax.random.randint(keys[1], (E,), 0, N)
    dst = jax.random.randint(keys[2], (E,), 0, N)
    edge_weight = jax.random.uniform(keys[3], (E,), jnp.float32, 0.1, 1.0)

    # nn.Linear params (xavier_normal_ weight, default uniform bias)
    std = (2.0 / (IN_DIM + OUT_DIM)) ** 0.5
    weight = std * jax.random.normal(keys[4], (OUT_DIM, IN_DIM), jnp.float32)
    bound = 1.0 / (IN_DIM ** 0.5)
    bias = jax.random.uniform(keys[5], (OUT_DIM,), jnp.float32, -bound, bound)

    # BatchNorm1d affine params (defaults gamma=1, beta=0; perturb to exercise them)
    gamma = 1.0 + 0.1 * jax.random.normal(keys[6], (OUT_DIM,), jnp.float32)
    beta = 0.1 * jax.random.normal(keys[7], (OUT_DIM,), jnp.float32)

    adj = build_weighted_adjacency(N, src, dst, edge_weight)
    ref = reference(adj, feature, weight, bias, gamma, beta)

    # Fused small-graph fast path (single pallas_call, everything VMEM-resident).
    out_fused = jax.block_until_ready(
        gcn_layer(adj, feature, weight, bias, gamma, beta))
    # Tiled / pipelined path (forced at this small size purely to exercise it).
    out_tiled = jax.block_until_ready(
        gcn_layer(adj, feature, weight, bias, gamma, beta, force_tiled=True))

    for out in (out_fused, out_tiled):
        assert out.shape == (N, OUT_DIM)
        assert bool(jnp.all(jnp.isfinite(out)))
        err = jnp.abs(out - ref)
        # bf16 adjacency / feature / linear operands vs. a pure-f32 reference.
        assert float(jnp.max(err)) < 1e-1
        assert float(jnp.mean(err)) < 1e-2

    print("KERNEL_OK")
</pallas_src>

<mosaic_0001>
module attributes {stable_mosaic.version = 11 : i64} {
  func.func @_gcn_fused_kernel(%arg0: memref<256x256xbf16, #tpu.memory_space<vmem>>, %arg1: memref<256x128xbf16, #tpu.memory_space<vmem>>, %arg2: memref<128x128xbf16, #tpu.memory_space<vmem>>, %arg3: memref<1x128xf32, #tpu.memory_space<vmem>>, %arg4: memref<1x128xf32, #tpu.memory_space<vmem>>, %arg5: memref<1x128xf32, #tpu.memory_space<vmem>>, %arg6: memref<256x128xf32, #tpu.memory_space<vmem>>) attributes {dimension_semantics = [], scalar_prefetch = 0 : i64, scratch_operands = 0 : i64, tpu.core_type = #tpu.core_type<tc>} {
    %c0 = arith.constant 0 : index
    %c0_0 = arith.constant 0 : index
    %0 = vector.load %arg0[%c0, %c0_0] : memref<256x256xbf16, #tpu.memory_space<vmem>>, vector<256x256xbf16>
    %c0_1 = arith.constant 0 : index
    %c0_2 = arith.constant 0 : index
    %1 = vector.load %arg1[%c0_1, %c0_2] : memref<256x128xbf16, #tpu.memory_space<vmem>>, vector<256x128xbf16>
    %cst = arith.constant dense<0.000000e+00> : vector<256x128xf32>
    %2 = tpu.matmul %0, %1, %cst {dimension_numbers = #tpu.dot_dimension_numbers<[1], [0], [0], [1], [0, 0, 1, 1], [], []>} : vector<256x256xbf16>, vector<256x128xbf16>, vector<256x128xf32> -> vector<256x128xf32>
    %3 = arith.truncf %2 : vector<256x128xf32> to vector<256x128xbf16>
    %c0_3 = arith.constant 0 : index
    %c0_4 = arith.constant 0 : index
    %4 = vector.load %arg2[%c0_3, %c0_4] : memref<128x128xbf16, #tpu.memory_space<vmem>>, vector<128x128xbf16>
    %cst_5 = arith.constant dense<0.000000e+00> : vector<256x128xf32>
    %5 = tpu.matmul %3, %4, %cst_5 {dimension_numbers = #tpu.dot_dimension_numbers<[1], [0], [0], [1], [0, 0, 1, 1], [], []>} : vector<256x128xbf16>, vector<128x128xbf16>, vector<256x128xf32> -> vector<256x128xf32>
    %c0_6 = arith.constant 0 : index
    %c0_7 = arith.constant 0 : index
    %6 = vector.load %arg3[%c0_6, %c0_7] : memref<1x128xf32, #tpu.memory_space<vmem>>, vector<1x128xf32>
    %7 = vector.broadcast %6 : vector<1x128xf32> to vector<256x128xf32>
    %8 = arith.addf %5, %7 : vector<256x128xf32>
    %cst_8 = arith.constant 0.000000e+00 : f32
    %9 = vector.broadcast %cst_8 : f32 to vector<256x128xf32>
    %10 = arith.maximumf %8, %9 : vector<256x128xf32>
    %cst_9 = arith.constant dense<0.000000e+00> : vector<128xf32>
    %11 = vector.multi_reduction <add>, %10, %cst_9 [0] : vector<256x128xf32> to vector<128xf32>
    %12 = vector.shape_cast %11 : vector<128xf32> to vector<1x128xf32>
    %cst_10 = arith.constant 3.906250e-03 : f32
    %13 = vector.broadcast %cst_10 : f32 to vector<1x128xf32>
    %14 = arith.mulf %12, %13 : vector<1x128xf32>
    %15 = vector.broadcast %14 : vector<1x128xf32> to vector<256x128xf32>
    %16 = arith.subf %10, %15 : vector<256x128xf32>
    %17 = arith.mulf %16, %16 : vector<256x128xf32>
    %cst_11 = arith.constant dense<0.000000e+00> : vector<128xf32>
    %18 = vector.multi_reduction <add>, %17, %cst_11 [0] : vector<256x128xf32> to vector<128xf32>
    %19 = vector.shape_cast %18 : vector<128xf32> to vector<1x128xf32>
    %cst_12 = arith.constant 3.906250e-03 : f32
    %20 = vector.broadcast %cst_12 : f32 to vector<1x128xf32>
    %21 = arith.mulf %19, %20 : vector<1x128xf32>
    %cst_13 = arith.constant 9.99999974E-6 : f32
    %22 = vector.broadcast %cst_13 : f32 to vector<1x128xf32>
    %23 = arith.addf %21, %22 : vector<1x128xf32>
    %24 = math.rsqrt %23 : vector<1x128xf32>
    %25 = vector.broadcast %24 : vector<1x128xf32> to vector<256x128xf32>
    %26 = arith.mulf %16, %25 : vector<256x128xf32>
    %c0_14 = arith.constant 0 : index
    %c0_15 = arith.constant 0 : index
    %27 = vector.load %arg4[%c0_14, %c0_15] : memref<1x128xf32, #tpu.memory_space<vmem>>, vector<1x128xf32>
    %28 = vector.broadcast %27 : vector<1x128xf32> to vector<256x128xf32>
    %29 = arith.mulf %26, %28 : vector<256x128xf32>
    %c0_16 = arith.constant 0 : index
    %c0_17 = arith.constant 0 : index
    %30 = vector.load %arg5[%c0_16, %c0_17] : memref<1x128xf32, #tpu.memory_space<vmem>>, vector<1x128xf32>
    %31 = vector.broadcast %30 : vector<1x128xf32> to vector<256x128xf32>
    %32 = arith.addf %29, %31 : vector<256x128xf32>
    %c0_18 = arith.constant 0 : index
    %c0_19 = arith.constant 0 : index
    %33 = vector.load %arg6[%c0_18, %c0_19] : memref<256x128xf32, #tpu.memory_space<vmem>>, vector<256x128xf32>
    tpu.vector_store %arg6[%c0_18, %c0_19], %32 {strides = array<i32>} : memref<256x128xf32, #tpu.memory_space<vmem>>, vector<256x128xf32>,
    return
  }
}

</mosaic_0001>

<bundles_post_ra>
// kernel: tpu_custom_call.1
= control target key start
LH: loop header
LB: loop body
LE: loop exit
PB: predicated region body
PF: predicated region fallthrough
CT: control target
= control target key end

     0   :  { %11 = vsyncpa [#allocation3], 0  ;;  %s2102_s0 = inlined_call_operand.hbm [shape: bf16[256,256], index: 0, kind: input, shape index: {}]   ;;  %s2103_s1 = inlined_call_operand.hbm [shape: bf16[256,128], index: 1, kind: input, shape index: {}]   ;;  %s2104_s2 = inlined_call_operand.hbm [shape: bf16[128,128], index: 2, kind: input, shape index: {}]   ;;  %s2105_s3 = inlined_call_operand.vmem [shape: f32[1,128], index: 3, kind: input, shape index: {}]   ;;  %s2106_s4 = inlined_call_operand.vmem [shape: f32[1,128], index: 4, kind: input, shape index: {}]   ;;  %s2107_s5 = inlined_call_operand.vmem [shape: f32[1,128], index: 5, kind: input, shape index: {}]   ;;  %s2108_s6 = inlined_call_operand.hbm [shape: f32[256,128], index: 6, kind: output, shape index: {}]  }
   0x1   :  { %12 = vsyncpa [#allocation6], 0 }
   0x2   :  { %13 = vsyncpa [#allocation4], 0  ;;  %s1564_s21 = smov [#allocation5]   ;;  %s1470_s25 = scalar_lea.hbm %s2103_s1, 2048 }
   0x3   :  { %s31_s22 = sshll.u32 %s1564_s21, 4  ;;  %p1471_p0 = scmp.ne.s32.totalorder %s2103_s1, %s1470_s25  ;;  %s32_s22 = int_to_ptr.vmem [resolvable:$true] %s31_s22 }
   0x4   :  { %p1474_p1 = scmp.lt.u32.totalorder %s1470_s25, %s2103_s1 }
   0x6   :  { %p1476_p2 = pnand %p1474_p1, %p1471_p0 }
   0x8   :  { %1479 = shalt.err (!%p1476_p2)
}
   0x9   :  { %s1480_s30 = scalar_lea.vmem %s32_s22, 2048  ;;  %p1485_p4 = scmp.lt.s32.totalorder %s32_s22, %s32_s22 }
   0xa   :  { %p1481_p3 = scmp.ne.s32.totalorder %s32_s22, %s1480_s30  ;;  %p1486_p5 = scmp.lt.s32.totalorder %s1480_s30, %s1480_s30 }
   0xc   :  { %p1487_p6 = por %p1486_p5, %p1485_p4 }
   0xe   :  { %p1488_p7 = pnand %p1487_p6, %p1481_p3 }
  0x10   :  { %1491 = shalt.err (!%p1488_p7)
}
  0x11   :  { %s1565_s7 = smov 64   ;;  %s1566_s8 = smov 4  }
  0x12   :  { %37 = dma.hbm_to_vmem [thread:$0]  %s2103_s1, 2048, %s32_s22, [#allocation6], %s1565_s7, %s1565_s7, %s1566_s8  }
  0x13   :  { %s1567_s11 = smov [#allocation2]   ;;  %s1492_s15 = scalar_lea.hbm %s2102_s0, 4096 }
  0x14   :  { %s19_s12 = sshll.u32 %s1567_s11, 4  ;;  %p1493_p8 = scmp.ne.s32.totalorder %s2102_s0, %s1492_s15  ;;  %s20_s12 = int_to_ptr.vmem [resolvable:$true] %s19_s12 }
  0x15   :  { %p1496_p9 = scmp.lt.u32.totalorder %s1492_s15, %s2102_s0 }
  0x17   :  { %p1498_p10 = pnand %p1496_p9, %p1493_p8 }
  0x19   :  { %1501 = shalt.err (!%p1498_p10)
}
  0x1a   :  { %s1502_s20 = scalar_lea.vmem %s20_s12, 4096  ;;  %p1507_p12 = scmp.lt.s32.totalorder %s20_s12, %s20_s12 }
  0x1b   :  { %p1503_p11 = scmp.ne.s32.totalorder %s20_s12, %s1502_s20  ;;  %p1508_p13 = scmp.lt.s32.totalorder %s1502_s20, %s1502_s20 }
  0x1d   :  { %p1509_p0 = por %p1508_p13, %p1507_p12 }
  0x1f   :  { %p1510_p1 = pnand %p1509_p0, %p1503_p11 }
  0x21   :  { %1513 = shalt.err (!%p1510_p1)
}
  0x22   :  { %s1568_s1 = smov 128   ;;  %s1569_s21 = smov 8  }
  0x23   :  { %25 = dma.hbm_to_vmem [thread:$0]  %s2102_s0, 4096, %s20_s12, [#allocation3], %s1568_s1, %s1568_s1, %s1569_s21  }
  0x24   :  { %s1570_s24 = smov [#allocation7]   ;;  %s1514_s28 = scalar_lea.hbm %s2104_s2, 1024 }
  0x25   :  { %s43_s25 = sshll.u32 %s1570_s24, 4  ;;  %p1515_p2 = scmp.ne.s32.totalorder %s2104_s2, %s1514_s28  ;;  %s44_s25 = int_to_ptr.vmem [resolvable:$true] %s43_s25 }
  0x26   :  { %p1518_p3 = scmp.lt.u32.totalorder %s1514_s28, %s2104_s2 }
  0x28   :  { %p1520_p4 = pnand %p1518_p3, %p1515_p2 }
  0x2a   :  { %1523 = shalt.err (!%p1520_p4)
}
  0x2b   :  { %s1524_s11 = scalar_lea.vmem %s44_s25, 1024  ;;  %p1529_p6 = scmp.lt.s32.totalorder %s44_s25, %s44_s25 }
  0x2c   :  { %p1525_p5 = scmp.ne.s32.totalorder %s44_s25, %s1524_s11  ;;  %p1530_p7 = scmp.lt.s32.totalorder %s1524_s11, %s1524_s11 }
  0x2e   :  { %p1531_p8 = por %p1530_p7, %p1529_p6 }
  0x30   :  { %p1532_p9 = pnand %p1531_p8, %p1525_p5 }
  0x32   :  { %1535 = shalt.err (!%p1532_p9)
}
  0x33   :  { %49 = dma.hbm_to_vmem [thread:$0]  %s2104_s2, 1024, %s44_s25, [#allocation6], %s1565_s7, %s1565_s7, %s1566_s8  }
  0x34   :  { %1558 = dma.done.wait [#allocation3], 4096  }
  0x35   :  { %1559 = vsyncadd [#allocation3], 4294963200 }
  0x36   :  { %1560 = dma.done.wait [#allocation6], 3072  }
  0x37   :  { %1561 = vsyncadd [#allocation6], 4294964224  ;;  %v1396_v0 = vld [vmem:[#allocation5 + $0x40] sm:$0xff]   ;;  %v1398_v2 = vld [vmem:[#allocation5 + $0x48] sm:$0xff]  }
  0x38   :  { %v1397_v1 = vld [vmem:[#allocation5] sm:$0xff]   ;;  %1188 = vmatprep.subr.bf16.mxu0 %v1396_v0  ;;  %1372 = vmatprep.subr.bf16.mxu1 %v1396_v0  ;;  %v1399_v3 = vld [vmem:[#allocation5 + $0x8] sm:$0xff]   ;;  %v1400_v4 = vld [vmem:[#allocation5 + $0x50] sm:$0xff]  }
  0x39   :  { %1189 = vmatpush3.bf16.msra.mxu0 %v1397_v1  ;;  %1380 = vmatpush3.bf16.msra.mxu1 %v1397_v1  ;;  %v1401_v5 = vld [vmem:[#allocation5 + $0x10] sm:$0xff]   ;;  %v1402_v6 = vld [vmem:[#allocation5 + $0x58] sm:$0xff]   ;;  %v1404_v8 = vld [vmem:[#allocation5 + $0x60] sm:$0xff]  }
  0x3a   :  { %1190 = vmatprep.subr.bf16.mxu0 %v1398_v2  ;;  %1373 = vmatprep.subr.bf16.mxu1 %v1398_v2  ;;  %v1403_v7 = vld [vmem:[#allocation5 + $0x18] sm:$0xff]   ;;  %v1405_v9 = vld [vmem:[#allocation5 + $0x20] sm:$0xff]   ;;  %v1406_v10 = vld [vmem:[#allocation5 + $0x68] sm:$0xff]  }
  0x3b   :  { %v1414_v11 = vld [vmem:[#allocation2 + $0x4] ss:$8 sps:$4 sm:$0xff]   ;;  %v1408_v13 = vld [vmem:[#allocation5 + $0x70] sm:$0xff]   ;;  %v1410_v15 = vld [vmem:[#allocation5 + $0x78] sm:$0xff]  }
  0x3c   :  { %v1407_v12 = vld [vmem:[#allocation5 + $0x28] sm:$0xff]   ;;  %418 = vmatprep.mubr.bf16.mxu0 %v1414_v11  ;;  %v1409_v14 = vld [vmem:[#allocation5 + $0x30] sm:$0xff]   ;;  %v1411_v16 = vld [vmem:[#allocation5 + $0x38] sm:$0xff]  }
  0x3d   :  { %1191 = vmatpush3.bf16.msra.mxu0 %v1399_v3  ;;  %1381 = vmatpush3.bf16.msra.mxu1 %v1399_v3  ;;  %v1412_v17 = vld [vmem:[#allocation2] ss:$8 sps:$4 sm:$0xff]   ;;  %v1444_v18 = vld [vmem:[#allocation2 + $0xc4] ss:$8 sps:$4 sm:$0xff]   ;;  %v1415_v19 = vld [vmem:[#allocation2 + $0x14] ss:$8 sps:$4 sm:$0xff]  }
  0x3e   :  { %1192 = vmatprep.subr.bf16.mxu0 %v1400_v4  ;;  %1374 = vmatprep.subr.bf16.mxu1 %v1400_v4  ;;  %v1442_v20 = vld [vmem:[#allocation2 + $0xc0] ss:$8 sps:$4 sm:$0xff]   ;;  %v1448_v21 = vld [vmem:[#allocation2 + $0xd4] ss:$8 sps:$4 sm:$0xff]   ;;  %v1417_v22 = vld [vmem:[#allocation2 + $0x10] ss:$8 sps:$4 sm:$0xff]  }
  0x3f   :  { %514 = vmatprep.mubr.bf16.mxu1 %v1444_v18  ;;  %v1418_v23 = vld [vmem:[#allocation2 + $0x24] ss:$8 sps:$4 sm:$0xff]   ;;  %v1450_v24 = vld [vmem:[#allocation2 + $0xd0] ss:$8 sps:$4 sm:$0xff]   ;;  %v1420_v29 = vld [vmem:[#allocation2 + $0x20] ss:$8 sps:$4 sm:$0xff]  }
  0x40   :  { %v1460_v25 = vld [vmem:[#allocation7] sm:$0xff]   ;;  %v1461_v26 = vld [vmem:[#allocation7 + $0x8] sm:$0xff]   ;;  %v1462_v28 = vld [vmem:[#allocation7 + $0x10] sm:$0xff]  }
  0x41   :  { %1193 = vmatpush3.bf16.msra.mxu0 %v1401_v5  ;;  %1382 = vmatpush3.bf16.msra.mxu1 %v1401_v5  ;;  %v1454_v27 = vld [vmem:[#allocation2 + $0xe4] ss:$8 sps:$4 sm:$0xff]   ;;  %v1463_v30 = vld [vmem:[#allocation7 + $0x18] sm:$0xff]   ;;  %v1456_v32 = vld [vmem:[#allocation2 + $0xe0] ss:$8 sps:$4 sm:$0xff]  }
  0x42   :  { %1194 = vmatprep.subr.bf16.mxu0 %v1402_v6  ;;  %1375 = vmatprep.subr.bf16.mxu1 %v1402_v6  ;;  %v1421_v31 = vld [vmem:[#allocation2 + $0x34] ss:$8 sps:$4 sm:$0xff]   ;;  %v1423_v34 = vld [vmem:[#allocation2 + $0x30] ss:$8 sps:$4 sm:$0xff]   ;;  %v1424_v35 = vld [vmem:[#allocation2 + $0x44] ss:$8 sps:$4 sm:$0xff]  }
  0x43   :  { %v1457_v33 = vld [vmem:[#allocation2 + $0xf4] ss:$8 sps:$4 sm:$0xff]   ;;  %v1459_v36 = vld [vmem:[#allocation2 + $0xf0] ss:$8 sps:$4 sm:$0xff]   ;;  %v1426_v37 = vld [vmem:[#allocation2 + $0x40] ss:$8 sps:$4 sm:$0xff]  }
  0x44   :  { %v1427_v38 = vld [vmem:[#allocation2 + $0x54] ss:$8 sps:$4 sm:$0xff]   ;;  %v1429_v39 = vld [vmem:[#allocation2 + $0x50] ss:$8 sps:$4 sm:$0xff]   ;;  %v1430_v40 = vld [vmem:[#allocation2 + $0x64] ss:$8 sps:$4 sm:$0xff]  }
  0x45   :  { %1195 = vmatpush3.bf16.msra.mxu0 %v1403_v7  ;;  %1383 = vmatpush3.bf16.msra.mxu1 %v1403_v7  ;;  %v1432_v41 = vld [vmem:[#allocation2 + $0x60] ss:$8 sps:$4 sm:$0xff]   ;;  %v1433_v42 = vld [vmem:[#allocation2 + $0x74] ss:$8 sps:$4 sm:$0xff]   ;;  %v1435_v43 = vld [vmem:[#allocation2 + $0x70] ss:$8 sps:$4 sm:$0xff]  }
  0x46   :  { %1196 = vmatprep.subr.bf16.mxu0 %v1404_v8  ;;  %1376 = vmatprep.subr.bf16.mxu1 %v1404_v8  ;;  %v1436_v44 = vld [vmem:[#allocation2 + $0x84] ss:$8 sps:$4 sm:$0xff]   ;;  %v1438_v45 = vld [vmem:[#allocation2 + $0x80] ss:$8 sps:$4 sm:$0xff]   ;;  %v1439_v46 = vld [vmem:[#allocation2 + $0x94] ss:$8 sps:$4 sm:$0xff]  }
  0x47   :  { %v1441_v47 = vld [vmem:[#allocation2 + $0x90] ss:$8 sps:$4 sm:$0xff]   ;;  %v1445_v48 = vld [vmem:[#allocation2 + $0xa4] ss:$8 sps:$4 sm:$0xff]   ;;  %v1447_v49 = vld [vmem:[#allocation2 + $0xa0] ss:$8 sps:$4 sm:$0xff]  }
  0x48   :  { %v1451_v50 = vld [vmem:[#allocation2 + $0xb4] ss:$8 sps:$4 sm:$0xff]   ;;  %v1464_v51 = vld [vmem:[#allocation7 + $0x20] sm:$0xff]   ;;  %v1453_v52 = vld [vmem:[#allocation2 + $0xb0] ss:$8 sps:$4 sm:$0xff]  }
  0x49   :  { %1197 = vmatpush3.bf16.msra.mxu0 %v1405_v9  ;;  %1384 = vmatpush3.bf16.msra.mxu1 %v1405_v9  ;;  %v1465_v53 = vld [vmem:[#allocation7 + $0x28] sm:$0xff]   ;;  %v1466_v54 = vld [vmem:[#allocation7 + $0x30] sm:$0xff]   ;;  %v1467_v55 = vld [vmem:[#allocation7 + $0x38] sm:$0xff]  }
  0x4a   :  { %1198 = vmatprep.subr.bf16.mxu0 %v1406_v10  ;;  %1377 = vmatprep.subr.bf16.mxu1 %v1406_v10 }
  0x4d   :  { %1199 = vmatpush3.bf16.msra.mxu0 %v1407_v12  ;;  %1385 = vmatpush3.bf16.msra.mxu1 %v1407_v12 }
  0x4e   :  { %1200 = vmatprep.subr.bf16.mxu0 %v1408_v13  ;;  %1378 = vmatprep.subr.bf16.mxu1 %v1408_v13 }
  0x51   :  { %1201 = vmatpush3.bf16.msra.mxu0 %v1409_v14  ;;  %1386 = vmatpush3.bf16.msra.mxu1 %v1409_v14 }
  0x52   :  { %1202 = vmatprep.subr.bf16.mxu0 %v1410_v15  ;;  %1379 = vmatprep.subr.bf16.mxu1 %v1410_v15 }
  0x55   :  { %1203 = vmatpush3.bf16.msra.mxu0 %v1411_v16  ;;  %1387 = vmatpush3.bf16.msra.mxu1 %v1411_v16 }
  0x56   :  { %1324 = vmatprep.subr.bf16.mxu1 %v1460_v25 }
  0x58   :  { %419 = vmatmul.mubr.bf16.vlgmr.msra.gmra.mrb[0].mxu0 %v1412_v17  ;;  %515 = vmatmul.mubr.bf16.vlgmr.msra.gmra.mrb[0].mxu1 %v1442_v20 }
  0x59   :  { %426 = vmatprep.mubr.bf16.mxu0 %v1415_v19  ;;  %522 = vmatprep.mubr.bf16.mxu1 %v1448_v21 }
  0x5a   :  { %1325 = vmatpush3.bf16.msra.mxu1 %v1460_v25 }
  0x5b   :  { %1326 = vmatprep.subr.bf16.mxu1 %v1461_v26 }
  0x5e   :  { %1327 = vmatpush3.bf16.msra.mxu1 %v1461_v26 }
  0x5f   :  { %1328 = vmatprep.subr.bf16.mxu1 %v1462_v28 }
  0x60   :  { %427 = vmatmul.mubr.bf16.gmra.mrb[4].mxu0 %v1417_v22  ;;  %523 = vmatmul.mubr.bf16.gmra.mrb[4].mxu1 %v1450_v24 }
  0x61   :  { %434 = vmatprep.mubr.bf16.mxu0 %v1418_v23  ;;  %530 = vmatprep.mubr.bf16.mxu1 %v1454_v27 }
  0x62   :  { %1329 = vmatpush3.bf16.msra.mxu1 %v1462_v28 }
  0x63   :  { %1330 = vmatprep.subr.bf16.mxu1 %v1463_v30 }
  0x66   :  { %1331 = vmatpush3.bf16.msra.mxu1 %v1463_v30 }
  0x67   :  { %1332 = vmatprep.subr.bf16.mxu1 %v1464_v51 }
  0x68   :  { %435 = vmatmul.mubr.bf16.gmra.mrb[8].mxu0 %v1420_v29  ;;  %531 = vmatmul.mubr.bf16.gmra.mrb[8].mxu1 %v1456_v32 }
  0x69   :  { %442 = vmatprep.mubr.bf16.mxu0 %v1421_v31  ;;  %538 = vmatprep.mubr.bf16.mxu1 %v1457_v33 }
  0x6a   :  { %1333 = vmatpush3.bf16.msra.mxu1 %v1464_v51 }
  0x6b   :  { %1334 = vmatprep.subr.bf16.mxu1 %v1465_v53 }
  0x6e   :  { %1335 = vmatpush3.bf16.msra.mxu1 %v1465_v53 }
  0x6f   :  { %1336 = vmatprep.subr.bf16.mxu1 %v1466_v54 }
  0x70   :  { %443 = vmatmul.mubr.bf16.gmra.mrb[12].mxu0 %v1423_v34  ;;  %539 = vmatmul.mubr.bf16.gmra.mrb[12].mxu1 %v1459_v36 }
  0x71   :  { %450 = vmatprep.mubr.bf16.mxu0 %v1424_v35 }
  0x72   :  { %1337 = vmatpush3.bf16.msra.mxu1 %v1466_v54 }
  0x73   :  { %1338 = vmatprep.subr.bf16.mxu1 %v1467_v55 }
  0x76   :  { %1339 = vmatpush3.bf16.msra.mxu1 %v1467_v55 }
  0x78   :  { %451 = vmatmul.mubr.bf16.gmra.mrb[16].mxu0 %v1426_v37 }
  0x79   :  { %458 = vmatprep.mubr.bf16.mxu0 %v1427_v38 }
  0x80   :  { %459 = vmatmul.mubr.bf16.gmra.mrb[20].mxu0 %v1429_v39 }
  0x81   :  { %466 = vmatprep.mubr.bf16.mxu0 %v1430_v40 }
  0x88   :  { %467 = vmatmul.mubr.bf16.gmra.mrb[24].mxu0 %v1432_v41 }
  0x89   :  { %474 = vmatprep.mubr.bf16.mxu0 %v1433_v42 }
  0x90   :  { %475 = vmatmul.mubr.bf16.gmra.mrb[28].mxu0 %v1435_v43 }
  0x91   :  { %482 = vmatprep.mubr.bf16.mxu0 %v1436_v44 }
  0x98   :  { %483 = vmatmul.mubr.bf16.gmra.mrb[32].mxu0 %v1438_v45 }
  0x99   :  { %490 = vmatprep.mubr.bf16.mxu0 %v1439_v46 }
  0xa0   :  { %491 = vmatmul.mubr.bf16.gmra.mrb[36].mxu0 %v1441_v47 }
  0xa1   :  { %498 = vmatprep.mubr.bf16.mxu0 %v1445_v48 }
  0xa8   :  { %499 = vmatmul.mubr.bf16.gmra.mrb[40].mxu0 %v1447_v49 }
  0xa9   :  { %506 = vmatprep.mubr.bf16.mxu0 %v1451_v50 }
  0xb0   :  { %507 = vmatmul.mubr.bf16.gmra.mrb[44].mxu0 %v1453_v52 }
 0x12b   :  { %v1204_v56 = vpop.f32.mrb[0].mxu0  ;;  %v1276_v58 = vpop.f32.mrb[0].mxu1 }
 0x12c   :  { %v1205_v57 = vpop.f32.mrb[1].mxu0  ;;  %v1277_v61 = vpop.f32.mrb[1].mxu1 }
 0x12d   :  { %v1206_v59 = vadd.f32 %v1205_v57, %v1204_v56  ;;  %v1207_v60 = vpop.f32.mrb[2].mxu0  ;;  %v1652_v63 = vadd.f32 %v1277_v61, %v1276_v58  ;;  %v1279_v0 = vpop.f32.mrb[2].mxu1 }
 0x12e   :  { %v1208_v62 = vpop.f32.mrb[3].mxu0  ;;  %v1280_v2 = vpop.f32.mrb[3].mxu1 }
 0x12f   :  { %v1209_v1 = vadd.f32 %v1208_v62, %v1207_v60  ;;  %v1654_v3 = vadd.f32 %v1280_v2, %v1279_v0 }
 0x131   :  { %v547_v4 = vpack.c.bf16 %v1209_v1, %v1206_v59  ;;  %v559_v5 = vpack.c.bf16 %v1654_v3, %v1652_v63  ;;  %v1691_v63 = vld [vmem:[%s2105_s3] ss:$0 sm:$0xff] }
 0x133   :  { %v1210_v6 = vpop.f32.mrb[4].mxu0  ;;  %1340 = vmatprep.mubr.bf16.mxu1 %v547_v4  ;;  %v1282_v8 = vpop.f32.mrb[4].mxu1 }
 0x134   :  { %v1211_v7 = vpop.f32.mrb[5].mxu0  ;;  %v1283_v11 = vpop.f32.mrb[5].mxu1 }
 0x135   :  { %v1212_v9 = vadd.f32 %v1211_v7, %v1210_v6  ;;  %v1213_v10 = vpop.f32.mrb[6].mxu0  ;;  %v1658_v13 = vadd.f32 %v1283_v11, %v1282_v8  ;;  %v1285_v14 = vpop.f32.mrb[6].mxu1 }
 0x136   :  { %v1214_v12 = vpop.f32.mrb[7].mxu0  ;;  %v1286_v16 = vpop.f32.mrb[7].mxu1 }
 0x137   :  { %v1215_v15 = vadd.f32 %v1214_v12, %v1213_v10  ;;  %v1660_v17 = vadd.f32 %v1286_v16, %v1285_v14 }
 0x139   :  { %v548_v18 = vpack.c.bf16 %v1215_v15, %v1212_v9  ;;  %v560_v19 = vpack.c.bf16 %v1660_v17, %v1658_v13 }
 0x13b   :  { %v1216_v20 = vpop.f32.mrb[8].mxu0  ;;  %1341 = vmatmul.mubr.bf16.vlgmr.msra.gmra.mrb[16].mxu1 %v548_v18  ;;  %v1288_v22 = vpop.f32.mrb[8].mxu1 }
 0x13c   :  { %v1217_v21 = vpop.f32.mrb[9].mxu0  ;;  %v1289_v25 = vpop.f32.mrb[9].mxu1 }
 0x13d   :  { %v1218_v23 = vadd.f32 %v1217_v21, %v1216_v20  ;;  %v1219_v24 = vpop.f32.mrb[10].mxu0  ;;  %v1664_v27 = vadd.f32 %v1289_v25, %v1288_v22  ;;  %v1291_v28 = vpop.f32.mrb[10].mxu1 }
 0x13e   :  { %v1220_v26 = vpop.f32.mrb[11].mxu0  ;;  %v1292_v30 = vpop.f32.mrb[11].mxu1 }
 0x13f   :  { %v1221_v29 = vadd.f32 %v1220_v26, %v1219_v24  ;;  %v1666_v31 = vadd.f32 %v1292_v30, %v1291_v28 }
 0x141   :  { %v549_v32 = vpack.c.bf16 %v1221_v29, %v1218_v23  ;;  %v561_v33 = vpack.c.bf16 %v1666_v31, %v1664_v27 }
 0x143   :  { %v1222_v34 = vpop.f32.mrb[12].mxu0  ;;  %1344 = vmatprep.mubr.bf16.mxu1 %v549_v32  ;;  %v1294_v36 = vpop.f32.mrb[12].mxu1 }
 0x144   :  { %v1223_v35 = vpop.f32.mrb[13].mxu0  ;;  %v1295_v39 = vpop.f32.mrb[13].mxu1 }
 0x145   :  { %v1224_v37 = vadd.f32 %v1223_v35, %v1222_v34  ;;  %v1225_v38 = vpop.f32.mrb[14].mxu0  ;;  %v1670_v41 = vadd.f32 %v1295_v39, %v1294_v36  ;;  %v1297_v42 = vpop.f32.mrb[14].mxu1 }
 0x146   :  { %v1226_v40 = vpop.f32.mrb[15].mxu0  ;;  %v1298_v44 = vpop.f32.mrb[15].mxu1 }
 0x147   :  { %v1227_v43 = vadd.f32 %v1226_v40, %v1225_v38  ;;  %v1672_v45 = vadd.f32 %v1298_v44, %v1297_v42 }
 0x149   :  { %v550_v46 = vpack.c.bf16 %v1227_v43, %v1224_v37  ;;  %v562_v47 = vpack.c.bf16 %v1672_v45, %v1670_v41 }
 0x14b   :  { %v1228_v48 = vpop.f32.mrb[16].mxu0  ;;  %1345 = vmatmul.mubr.bf16.gmra.mrb[20].mxu1 %v550_v46 }
 0x14c   :  { %v1229_v49 = vpop.f32.mrb[17].mxu0 }
 0x14d   :  { %v1230_v50 = vadd.f32 %v1229_v49, %v1228_v48  ;;  %v1231_v51 = vpop.f32.mrb[18].mxu0 }
 0x14e   :  { %v1232_v52 = vpop.f32.mrb[19].mxu0 }
 0x14f   :  { %v1233_v53 = vadd.f32 %v1232_v52, %v1231_v51 }
 0x151   :  { %v551_v54 = vpack.c.bf16 %v1233_v53, %v1230_v50 }
 0x153   :  { %v1234_v55 = vpop.f32.mrb[20].mxu0  ;;  %1348 = vmatprep.mubr.bf16.mxu1 %v551_v54 }
 0x154   :  { %v1235_v56 = vpop.f32.mrb[21].mxu0 }
 0x155   :  { %v1236_v57 = vadd.f32 %v1235_v56, %v1234_v55  ;;  %v1237_v58 = vpop.f32.mrb[22].mxu0 }
 0x156   :  { %v1238_v59 = vpop.f32.mrb[23].mxu0 }
 0x157   :  { %v1239_v60 = vadd.f32 %v1238_v59, %v1237_v58 }
 0x159   :  { %v552_v61 = vpack.c.bf16 %v1239_v60, %v1236_v57 }
 0x15b   :  { %v1240_v62 = vpop.f32.mrb[24].mxu0  ;;  %1349 = vmatmul.mubr.bf16.gmra.mrb[24].mxu1 %v552_v61 }
 0x15c   :  { %v1241_v0 = vpop.f32.mrb[25].mxu0 }
 0x15d   :  { %v1242_v1 = vadd.f32 %v1241_v0, %v1240_v62  ;;  %v1243_v2 = vpop.f32.mrb[26].mxu0 }
 0x15e   :  { %v1244_v4 = vpop.f32.mrb[27].mxu0 }
 0x15f   :  { %v1245_v6 = vadd.f32 %v1244_v4, %v1243_v2 }
 0x161   :  { %v553_v7 = vpack.c.bf16 %v1245_v6, %v1242_v1 }
 0x163   :  { %v1246_v8 = vpop.f32.mrb[28].mxu0  ;;  %1352 = vmatprep.mubr.bf16.mxu1 %v553_v7 }
 0x164   :  { %v1247_v9 = vpop.f32.mrb[29].mxu0 }
 0x165   :  { %v1248_v10 = vadd.f32 %v1247_v9, %v1246_v8  ;;  %v1249_v11 = vpop.f32.mrb[30].mxu0 }
 0x166   :  { %v1250_v12 = vpop.f32.mrb[31].mxu0 }
 0x167   :  { %v1251_v14 = vadd.f32 %v1250_v12, %v1249_v11 }
 0x169   :  { %v554_v15 = vpack.c.bf16 %v1251_v14, %v1248_v10 }
 0x16b   :  { %v1252_v16 = vpop.f32.mrb[32].mxu0  ;;  %1353 = vmatmul.mubr.bf16.gmra.mrb[28].mxu1 %v554_v15 }
 0x16c   :  { %v1253_v18 = vpop.f32.mrb[33].mxu0 }
 0x16d   :  { %v1254_v20 = vadd.f32 %v1253_v18, %v1252_v16  ;;  %v1255_v21 = vpop.f32.mrb[34].mxu0 }
 0x16e   :  { %v1256_v22 = vpop.f32.mrb[35].mxu0 }
 0x16f   :  { %v1257_v23 = vadd.f32 %v1256_v22, %v1255_v21 }
 0x171   :  { %v555_v24 = vpack.c.bf16 %v1257_v23, %v1254_v20 }
 0x173   :  { %v1258_v25 = vpop.f32.mrb[36].mxu0  ;;  %1356 = vmatprep.mubr.bf16.mxu1 %v555_v24 }
 0x174   :  { %v1259_v26 = vpop.f32.mrb[37].mxu0 }
 0x175   :  { %v1260_v28 = vadd.f32 %v1259_v26, %v1258_v25  ;;  %v1261_v29 = vpop.f32.mrb[38].mxu0 }
 0x176   :  { %v1262_v30 = vpop.f32.mrb[39].mxu0 }
 0x177   :  { %v1263_v32 = vadd.f32 %v1262_v30, %v1261_v29 }
 0x179   :  { %v556_v34 = vpack.c.bf16 %v1263_v32, %v1260_v28 }
 0x17b   :  { %v1264_v35 = vpop.f32.mrb[40].mxu0  ;;  %1357 = vmatmul.mubr.bf16.gmra.mrb[32].mxu1 %v556_v34 }
 0x17c   :  { %v1265_v36 = vpop.f32.mrb[41].mxu0 }
 0x17d   :  { %v1266_v37 = vadd.f32 %v1265_v36, %v1264_v35  ;;  %v1267_v38 = vpop.f32.mrb[42].mxu0 }
 0x17e   :  { %v1268_v39 = vpop.f32.mrb[43].mxu0 }
 0x17f   :  { %v1269_v40 = vadd.f32 %v1268_v39, %v1267_v38 }
 0x181   :  { %v557_v42 = vpack.c.bf16 %v1269_v40, %v1266_v37 }
 0x183   :  { %v1270_v43 = vpop.f32.mrb[44].mxu0  ;;  %1360 = vmatprep.mubr.bf16.mxu1 %v557_v42 }
 0x184   :  { %v1271_v44 = vpop.f32.mrb[45].mxu0 }
 0x185   :  { %v1272_v46 = vadd.f32 %v1271_v44, %v1270_v43  ;;  %v1273_v48 = vpop.f32.mrb[46].mxu0 }
 0x186   :  { %v1274_v49 = vpop.f32.mrb[47].mxu0 }
 0x187   :  { %v1275_v50 = vadd.f32 %v1274_v49, %v1273_v48 }
 0x189   :  { %v558_v51 = vpack.c.bf16 %v1275_v50, %v1272_v46 }
 0x18b   :  { %1361 = vmatmul.mubr.bf16.gmra.mrb[36].mxu1 %v558_v51 }
 0x18c   :  { %1364 = vmatprep.mubr.bf16.mxu1 %v559_v5 }
 0x193   :  { %1365 = vmatmul.mubr.bf16.gmra.mrb[40].mxu1 %v560_v19 }
 0x194   :  { %1368 = vmatprep.mubr.bf16.mxu1 %v561_v33 }
 0x19b   :  { %1369 = vmatmul.mubr.bf16.gmra.mrb[44].mxu1 %v562_v47 }
 0x20e   :  { %v1342_v52 = vpop.f32.mrb[16].mxu1 }
 0x20f   :  { %v668_v53 = vpop.f32.mrb[17].mxu1  ;;  %v1701_v17 = vadd.f32 %v1342_v52, %v1691_v63 }
 0x210   :  { %v1343_v54 = vpop.f32.mrb[18].mxu1  ;;  %v1697_v5 = vadd.f32 %v1691_v63, %v668_v53 }
 0x211   :  { %v671_v55 = vpop.f32.mrb[19].mxu1  ;;  %v797_v47 = vmax.f32 %v1701_v17, 0.0  ;;  %v1710_v56 = vadd.f32 %v1343_v54, %v1691_v63 }
 0x212   :  { %v1694_v3 = vadd.f32 %v1691_v63, %v671_v55  ;;  %v795_v19 = vmax.f32 %v1697_v5, 0.0 }
 0x213   :  { %v798_v59 = vmax.f32 %v1710_v56, 0.0 }
 0x214   :  { %v796_v13 = vmax.f32 %v1694_v3, 0.0 }
 0x216   :  { %v827_v33 = vadd.f32 %v796_v13, %v795_v19 }
 0x218   :  { %v828_v58 = vadd.f32 %v827_v33, %v797_v47 }
 0x21a   :  { %v829_v62 = vadd.f32 %v828_v58, %v798_v59 }
 0x21e   :  { %v1346_v27 = vpop.f32.mrb[20].mxu1 }
 0x21f   :  { %v684_v31 = vpop.f32.mrb[21].mxu1  ;;  %v1728_v2 = vadd.f32 %v1346_v27, %v1691_v63 }
 0x220   :  { %v1347_v41 = vpop.f32.mrb[22].mxu1  ;;  %v1713_v57 = vadd.f32 %v1691_v63, %v684_v31 }
 0x221   :  { %v687_v45 = vpop.f32.mrb[23].mxu1  ;;  %v801_v8 = vmax.f32 %v1728_v2, 0.0  ;;  %v1734_v9 = vadd.f32 %v1347_v41, %v1691_v63 }
 0x222   :  { %v799_v60 = vmax.f32 %v1713_v57, 0.0  ;;  %v1720_v61 = vadd.f32 %v1691_v63, %v687_v45 }
 0x223   :  { %v802_v15 = vmax.f32 %v1734_v9, 0.0 }
 0x224   :  { %v830_v0 = vadd.f32 %v829_v62, %v799_v60  ;;  %v800_v1 = vmax.f32 %v1720_v61, 0.0 }
 0x226   :  { %v831_v4 = vadd.f32 %v830_v0, %v800_v1 }
 0x228   :  { %v832_v14 = vadd.f32 %v831_v4, %v801_v8 }
 0x22a   :  { %v833_v20 = vadd.f32 %v832_v14, %v802_v15 }
 0x22e   :  { %v1350_v6 = vpop.f32.mrb[24].mxu1 }
 0x22f   :  { %v700_v7 = vpop.f32.mrb[25].mxu1  ;;  %v1752_v23 = vadd.f32 %v1350_v6, %v1691_v63 }
 0x230   :  { %v1737_v10 = vadd.f32 %v1691_v63, %v700_v7  ;;  %v1351_v11 = vpop.f32.mrb[26].mxu1 }
 0x231   :  { %v703_v12 = vpop.f32.mrb[27].mxu1  ;;  %v805_v25 = vmax.f32 %v1752_v23, 0.0  ;;  %v1758_v26 = vadd.f32 %v1351_v11, %v1691_v63 }
 0x232   :  { %v803_v16 = vmax.f32 %v1737_v10, 0.0  ;;  %v1744_v18 = vadd.f32 %v1691_v63, %v703_v12 }
 0x233   :  { %v2113_v36 = vmax.f32 %v1758_v26, 0.0 }
 0x234   :  { %v834_v21 = vadd.f32 %v833_v20, %v803_v16  ;;  %v804_v22 = vmax.f32 %v1744_v18, 0.0 }
 0x236   :  { %v835_v24 = vadd.f32 %v834_v21, %v804_v22 }
 0x238   :  { %v836_v30 = vadd.f32 %v835_v24, %v805_v25 }
 0x23a   :  { %v837_v39 = vadd.f32 %v836_v30, %v2113_v36 }
 0x23e   :  { %v1354_v28 = vpop.f32.mrb[28].mxu1 }
 0x23f   :  { %v716_v29 = vpop.f32.mrb[29].mxu1  ;;  %v1776_v43 = vadd.f32 %v1354_v28, %v1691_v63 }
 0x240   :  { %v1763_v32 = vadd.f32 %v1691_v63, %v716_v29  ;;  %v1355_v34 = vpop.f32.mrb[30].mxu1 }
 0x241   :  { %v719_v35 = vpop.f32.mrb[31].mxu1  ;;  %v2110_v46 = vmax.f32 %v1776_v43, 0.0  ;;  %v1782_v48 = vadd.f32 %v1355_v34, %v1691_v63 }
 0x242   :  { %v2112_v37 = vmax.f32 %v1763_v32, 0.0  ;;  %v1768_v38 = vadd.f32 %v1691_v63, %v719_v35 }
 0x243   :  { %v2109_v52 = vmax.f32 %v1782_v48, 0.0 }
 0x244   :  { %v838_v40 = vadd.f32 %v837_v39, %v2112_v37  ;;  %v2111_v42 = vmax.f32 %v1768_v38, 0.0 }
 0x246   :  { %v839_v44 = vadd.f32 %v838_v40, %v2111_v42 }
 0x248   :  { %v840_v49 = vadd.f32 %v839_v44, %v2110_v46 }
 0x24a   :  { %v841_v33 = vadd.f32 %v840_v49, %v2109_v52 }
 0x24e   :  { %v1358_v50 = vpop.f32.mrb[32].mxu1 }
 0x24f   :  { %v732_v51 = vpop.f32.mrb[33].mxu1  ;;  %v1791_v27 = vadd.f32 %v1358_v50, %v1691_v63 }
 0x250   :  { %v1788_v53 = vadd.f32 %v1691_v63, %v732_v51  ;;  %v1359_v54 = vpop.f32.mrb[34].mxu1 }
 0x251   :  { %v735_v55 = vpop.f32.mrb[35].mxu1  ;;  %v1802_v58 = vadd.f32 %v1359_v54, %v1691_v63  ;;  %v813_v0 = vmax.f32 %v1791_v27, 0.0 }
 0x252   :  { %v811_v31 = vmax.f32 %v1788_v53, 0.0  ;;  %v1797_v41 = vadd.f32 %v1691_v63, %v735_v55 }
 0x253   :  { %v814_v6 = vmax.f32 %v1802_v58, 0.0 }
 0x254   :  { %v842_v45 = vadd.f32 %v841_v33, %v811_v31  ;;  %v812_v62 = vmax.f32 %v1797_v41, 0.0 }
 0x256   :  { %v843_v4 = vadd.f32 %v842_v45, %v812_v62 }
 0x258   :  { %v844_v7 = vadd.f32 %v843_v4, %v813_v0 }
 0x25a   :  { %v845_v11 = vadd.f32 %v844_v7, %v814_v6 }
 0x25e   :  { %v1362_v12 = vpop.f32.mrb[36].mxu1 }
 0x25f   :  { %v748_v14 = vpop.f32.mrb[37].mxu1  ;;  %v757_v28 = vadd.f32 %v1362_v12, %v1691_v63 }
 0x260   :  { %v749_v20 = vadd.f32 %v1691_v63, %v748_v14  ;;  %v1363_v21 = vpop.f32.mrb[38].mxu1 }
 0x261   :  { %v751_v24 = vpop.f32.mrb[39].mxu1  ;;  %v760_v35 = vadd.f32 %v1363_v21, %v1691_v63  ;;  %v817_v40 = vmax.f32 %v757_v28, 0.0 }
 0x262   :  { %v815_v29 = vmax.f32 %v749_v20, 0.0  ;;  %v752_v30 = vadd.f32 %v1691_v63, %v751_v24 }
 0x263   :  { %v818_v51 = vmax.f32 %v760_v35, 0.0 }
 0x264   :  { %v846_v34 = vadd.f32 %v845_v11, %v815_v29  ;;  %v816_v39 = vmax.f32 %v752_v30, 0.0 }
 0x266   :  { %v847_v44 = vadd.f32 %v846_v34, %v816_v39  ;;  %v1366_v49 = vpop.f32.mrb[40].mxu1 }
 0x267   :  { %v764_v50 = vpop.f32.mrb[41].mxu1  ;;  %v773_v41 = vadd.f32 %v1366_v49, %v1691_v63 }
 0x268   :  { %v848_v54 = vadd.f32 %v847_v44, %v817_v40  ;;  %v765_v55 = vadd.f32 %v1691_v63, %v764_v50  ;;  %v1367_v27 = vpop.f32.mrb[42].mxu1 }
 0x269   :  { %v767_v33 = vpop.f32.mrb[43].mxu1  ;;  %v776_v11 = vadd.f32 %v1367_v27, %v1691_v63  ;;  %v821_v14 = vmax.f32 %v773_v41, 0.0 }
 0x26a   :  { %v819_v45 = vmax.f32 %v765_v55, 0.0  ;;  %v849_v58 = vadd.f32 %v848_v54, %v818_v51  ;;  %v768_v4 = vadd.f32 %v1691_v63, %v767_v33 }
 0x26b   :  { %v822_v28 = vmax.f32 %v776_v11, 0.0 }
 0x26c   :  { %v850_v7 = vadd.f32 %v849_v58, %v819_v45  ;;  %v820_v12 = vmax.f32 %v768_v4, 0.0 }
 0x26e   :  { %v851_v20 = vadd.f32 %v850_v7, %v820_v12  ;;  %v1370_v21 = vpop.f32.mrb[44].mxu1 }
 0x26f   :  { %v780_v24 = vpop.f32.mrb[45].mxu1  ;;  %v789_v49 = vadd.f32 %v1370_v21, %v1691_v63 }
 0x270   :  { %v852_v30 = vadd.f32 %v851_v20, %v821_v14  ;;  %v781_v34 = vadd.f32 %v1691_v63, %v780_v24  ;;  %v1371_v35 = vpop.f32.mrb[46].mxu1 }
 0x271   :  { %v783_v44 = vpop.f32.mrb[47].mxu1  ;;  %v792_v27 = vadd.f32 %v1371_v35, %v1691_v63  ;;  %v825_v41 = vmax.f32 %v789_v49, 0.0 }
 0x272   :  { %v823_v50 = vmax.f32 %v781_v34, 0.0  ;;  %v853_v54 = vadd.f32 %v852_v30, %v822_v28  ;;  %v784_v55 = vadd.f32 %v1691_v63, %v783_v44 }
 0x273   :  { %v826_v7 = vmax.f32 %v792_v27, 0.0 }
 0x274   :  { %v854_v33 = vadd.f32 %v853_v54, %v823_v50  ;;  %v824_v58 = vmax.f32 %v784_v55, 0.0  ;;  %v2114_v54 = vmax.f32 %v1758_v26, 0.0 }
 0x276   :  { %v855_v4 = vadd.f32 %v854_v33, %v824_v58  ;;  %v2115_v33 = vmax.f32 %v1763_v32, 0.0 }
 0x278   :  { %v856_v52 = vadd.f32 %v855_v4, %v825_v41 }
 0x27a   :  { %v857_v11 = vadd.f32 %v856_v52, %v826_v7 }
 0x27c   :  { %v858_v20 = vrot.slane %v857_v11, 4 }
 0x27e   :  { %v859_v46 = vadd.f32 %v858_v20, %v857_v11 }
 0x280   :  { %v860_v24 = vrot.slane %v859_v46, 2 }
 0x282   :  { %v861_v42 = vadd.f32 %v860_v24, %v859_v46  ;;  %v2118_v24 = vmax.f32 %v1782_v48, 0.0 }
 0x284   :  { %v862_v37 = vrot.slane %v861_v42, 1 }
 0x286   :  { %v863_v36 = vadd.f32 %v862_v37, %v861_v42 }
 0x288   :  { %v864_v21 = vmul.f32 0.00390625, %v863_v36 }
 0x28a   :  { %v1821_v30 = vsub.f32 %v811_v31, %v864_v21  ;;  %v1823_v34 = vsub.f32 %v812_v62, %v864_v21  ;;  %v1825_v63 = vsub.f32 %v813_v0, %v864_v21  ;;  %v1827_v35 = vsub.f32 %v814_v6, %v864_v21 }
 0x28b   :  { %v1829_v44 = vsub.f32 %v815_v29, %v864_v21  ;;  %v1831_v52 = vsub.f32 %v816_v39, %v864_v21  ;;  %v1833_v49 = vsub.f32 %v817_v40, %v864_v21  ;;  %v1835_v46 = vsub.f32 %v818_v51, %v864_v21 }
 0x28c   :  { %v1837_v37 = vsub.f32 %v819_v45, %v864_v21  ;;  %v1839_v36 = vsub.f32 %v820_v12, %v864_v21  ;;  %v1841_v42 = vsub.f32 %v821_v14, %v864_v21  ;;  %v1843_v53 = vsub.f32 %v822_v28, %v864_v21 }
 0x28d   :  { %v1845_v31 = vsub.f32 %v823_v50, %v864_v21  ;;  %v1847_v62 = vsub.f32 %v824_v58, %v864_v21  ;;  %v1849_v0 = vsub.f32 %v825_v41, %v864_v21  ;;  %v1851_v6 = vsub.f32 %v826_v7, %v864_v21 }
 0x28e   :  { %v1855_v29 = vsub.f32 %v795_v19, %v864_v21  ;;  %v1859_v39 = vsub.f32 %v796_v13, %v864_v21  ;;  %v1863_v40 = vsub.f32 %v797_v47, %v864_v21  ;;  %v1871_v12 = vsub.f32 %v798_v59, %v864_v21 }
 0x28f   :  { %v1875_v5 = vsub.f32 %v799_v60, %v864_v21  ;;  %v1881_v17 = vsub.f32 %v800_v1, %v864_v21  ;;  %v1887_v56 = vsub.f32 %v801_v8, %v864_v21  ;;  %v1893_v60 = vsub.f32 %v802_v15, %v864_v21 }
 0x290   :  { %v897_v51 = vmul.f32 %v1855_v29, %v1855_v29  ;;  %v898_v45 = vmul.f32 %v1859_v39, %v1859_v39  ;;  %v899_v3 = vmul.f32 %v1863_v40, %v1863_v40  ;;  %v900_v19 = vmul.f32 %v1871_v12, %v1871_v12 }
 0x291   :  { %v901_v57 = vmul.f32 %v1875_v5, %v1875_v5  ;;  %v902_v61 = vmul.f32 %v1881_v17, %v1881_v17  ;;  %v1899_v14 = vsub.f32 %v803_v16, %v864_v21  ;;  %v903_v2 = vmul.f32 %v1887_v56, %v1887_v56 }
 0x292   :  { %v929_v13 = vadd.f32 %v898_v45, %v897_v51  ;;  %v1905_v28 = vsub.f32 %v804_v22, %v864_v21  ;;  %v904_v9 = vmul.f32 %v1893_v60, %v1893_v60  ;;  %v1911_v50 = vsub.f32 %v805_v25, %v864_v21 }
 0x293   :  { %v905_v10 = vmul.f32 %v1899_v14, %v1899_v14  ;;  %v1917_v55 = vsub.f32 %v2114_v54, %v864_v21  ;;  %v1923_v27 = vsub.f32 %v2115_v33, %v864_v21  ;;  %v2116_v58 = vmax.f32 %v1768_v38, 0.0 }
 0x294   :  { %v930_v47 = vadd.f32 %v929_v13, %v899_v3  ;;  %v906_v18 = vmul.f32 %v1905_v28, %v1905_v28  ;;  %v907_v23 = vmul.f32 %v1911_v50, %v1911_v50  ;;  %v2117_v7 = vmax.f32 %v1776_v43, 0.0 }
 0x295   :  { %v1929_v41 = vsub.f32 %v2116_v58, %v864_v21  ;;  %v908_v26 = vmul.f32 %v1917_v55, %v1917_v55  ;;  %v909_v32 = vmul.f32 %v1923_v27, %v1923_v27  ;;  %v1941_v51 = vsub.f32 %v2118_v24, %v864_v21 }
 0x296   :  { %v931_v59 = vadd.f32 %v930_v47, %v900_v19  ;;  %v1935_v11 = vsub.f32 %v2117_v7, %v864_v21  ;;  %v913_v47 = vmul.f32 %v1821_v30, %v1821_v30  ;;  %v914_v48 = vmul.f32 %v1823_v34, %v1823_v34 }
 0x297   :  { %v910_v38 = vmul.f32 %v1929_v41, %v1929_v41  ;;  %v912_v43 = vmul.f32 %v1941_v51, %v1941_v51  ;;  %v921_v33 = vmul.f32 %v1837_v37, %v1837_v37  ;;  %v924_v7 = vmul.f32 %v1843_v53, %v1843_v53 }
 0x298   :  { %v932_v1 = vadd.f32 %v931_v59, %v901_v57  ;;  %v911_v3 = vmul.f32 %v1935_v11, %v1935_v11  ;;  %v915_v59 = vmul.f32 %v1825_v63, %v1825_v63 }
 0x29a   :  { %v933_v8 = vadd.f32 %v932_v1, %v902_v61  ;;  %v916_v1 = vmul.f32 %v1827_v35, %v1827_v35 }
 0x29c   :  { %v934_v15 = vadd.f32 %v933_v8, %v903_v2  ;;  %v917_v8 = vmul.f32 %v1829_v44, %v1829_v44 }
 0x29e   :  { %v935_v16 = vadd.f32 %v934_v15, %v904_v9  ;;  %v918_v15 = vmul.f32 %v1831_v52, %v1831_v52 }
 0x2a0   :  { %v936_v22 = vadd.f32 %v935_v16, %v905_v10  ;;  %v919_v16 = vmul.f32 %v1833_v49, %v1833_v49 }
 0x2a2   :  { %v937_v25 = vadd.f32 %v936_v22, %v906_v18  ;;  %v920_v18 = vmul.f32 %v1835_v46, %v1835_v46 }
 0x2a4   :  { %v938_v4 = vadd.f32 %v937_v25, %v907_v23  ;;  %v922_v25 = vmul.f32 %v1839_v36, %v1839_v36 }
 0x2a6   :  { %v939_v20 = vadd.f32 %v938_v4, %v908_v26  ;;  %v923_v26 = vmul.f32 %v1841_v42, %v1841_v42 }
 0x2a8   :  { %v940_v45 = vadd.f32 %v939_v20, %v909_v32  ;;  %v925_v20 = vmul.f32 %v1845_v31, %v1845_v31 }
 0x2aa   :  { %v941_v13 = vadd.f32 %v940_v45, %v910_v38  ;;  %v926_v38 = vmul.f32 %v1847_v62, %v1847_v62 }
 0x2ac   :  { %v942_v19 = vadd.f32 %v941_v13, %v911_v3  ;;  %v927_v3 = vmul.f32 %v1849_v0, %v1849_v0 }
 0x2ae   :  { %v943_v57 = vadd.f32 %v942_v19, %v912_v43  ;;  %v928_v43 = vmul.f32 %v1851_v6, %v1851_v6 }
 0x2b0   :  { %v944_v21 = vadd.f32 %v943_v57, %v913_v47 }
 0x2b2   :  { %v945_v61 = vadd.f32 %v944_v21, %v914_v48 }
 0x2b4   :  { %v946_v2 = vadd.f32 %v945_v61, %v915_v59 }
 0x2b6   :  { %v947_v9 = vadd.f32 %v946_v2, %v916_v1 }
 0x2b8   :  { %v948_v10 = vadd.f32 %v947_v9, %v917_v8 }
 0x2ba   :  { %v949_v54 = vadd.f32 %v948_v10, %v918_v15  ;;  %v1984_v15 = vld [vmem:[%s2106_s4] ss:$0 sm:$0xff]  ;;  %s1571_s4 = smov [#allocation8]  }
 0x2bc   :  { %v950_v22 = vadd.f32 %v949_v54, %v919_v16 }
 0x2be   :  { %v951_v23 = vadd.f32 %v950_v22, %v920_v18  ;;  %v1993_v22 = vld [vmem:[%s2107_s5] ss:$0 sm:$0xff]  ;;  %s1116_s5 = sshll.u32 %s1571_s4, 4  ;;  %s1117_s5 = int_to_ptr.vmem [resolvable:$true] %s1116_s5 }
 0x2bf   :  { %s1536_s15 = scalar_lea.vmem %s1117_s5, 4096  ;;  %p1541_p11 = scmp.lt.s32.totalorder %s1117_s5, %s1117_s5 }
 0x2c0   :  { %v952_v58 = vadd.f32 %v951_v23, %v921_v33  ;;  %p1537_p10 = scmp.ne.s32.totalorder %s1117_s5, %s1536_s15  ;;  %p1542_p12 = scmp.lt.s32.totalorder %s1536_s15, %s1536_s15 }
 0x2c2   :  { %v953_v4 = vadd.f32 %v952_v58, %v922_v25  ;;  %p1543_p13 = por %p1542_p12, %p1541_p11 }
 0x2c4   :  { %v954_v32 = vadd.f32 %v953_v4, %v923_v26  ;;  %p1544_p0 = pnand %p1543_p13, %p1537_p10 }
 0x2c6   :  { %v955_v24 = vadd.f32 %v954_v32, %v924_v7 }
 0x2c8   :  { %v956_v45 = vadd.f32 %v955_v24, %v925_v20 }
 0x2ca   :  { %v957_v13 = vadd.f32 %v956_v45, %v926_v38 }
 0x2cc   :  { %v958_v19 = vadd.f32 %v957_v13, %v927_v3 }
 0x2ce   :  { %v959_v47 = vadd.f32 %v958_v19, %v928_v43 }
 0x2d0   :  { %v960_v57 = vrot.slane %v959_v47, 4 }
 0x2d2   :  { %v961_v48 = vadd.f32 %v960_v57, %v959_v47 }
 0x2d4   :  { %v962_v21 = vrot.slane %v961_v48, 2 }
 0x2d6   :  { %v963_v59 = vadd.f32 %v962_v21, %v961_v48 }
 0x2d8   :  { %v964_v61 = vrot.slane %v963_v59, 1 }
 0x2da   :  { %v965_v1 = vadd.f32 %v964_v61, %v963_v59 }
 0x2dc   :  { %v966_v2 = vmul.f32 0.00390625, %v965_v1 }
 0x2de   :  { %v967_v8 = vadd.f32 1e-05, %v966_v2 }
 0x2e0   :  { %1468 = vrsqrt.f32 %v967_v8 }
 0x2ea   :  { %v1469_v9 = vpop.eup %1468 }
 0x2eb   :  { %v998_v10 = vmul.f32 %v1469_v9, %v1847_v62  ;;  %v969_v16 = vmul.f32 %v1469_v9, %v1855_v29  ;;  %v970_v54 = vmul.f32 %v1469_v9, %v1859_v39  ;;  %v971_v18 = vmul.f32 %v1469_v9, %v1863_v40 }
 0x2ec   :  { %v972_v33 = vmul.f32 %v1469_v9, %v1871_v12  ;;  %v973_v23 = vmul.f32 %v1469_v9, %v1875_v5  ;;  %v974_v25 = vmul.f32 %v1469_v9, %v1881_v17  ;;  %v975_v58 = vmul.f32 %v1469_v9, %v1887_v56 }
 0x2ed   :  { %v1037_v62 = vmul.f32 %v1984_v15, %v998_v10  ;;  %v976_v29 = vmul.f32 %v1469_v9, %v1893_v60  ;;  %v977_v39 = vmul.f32 %v1469_v9, %v1899_v14  ;;  %v978_v40 = vmul.f32 %v1469_v9, %v1905_v28 }
 0x2ee   :  { %v979_v26 = vmul.f32 %v1469_v9, %v1911_v50  ;;  %v980_v4 = vmul.f32 %v1469_v9, %v1917_v55  ;;  %v981_v12 = vmul.f32 %v1469_v9, %v1923_v27  ;;  %v982_v5 = vmul.f32 %v1469_v9, %v1929_v41 }
 0x2ef   :  { %v1076_v17 = vadd.f32 %v1993_v22, %v1037_v62  ;;  %v983_v56 = vmul.f32 %v1469_v9, %v1935_v11  ;;  %v984_v7 = vmul.f32 %v1469_v9, %v1941_v51  ;;  %v985_v60 = vmul.f32 %v1469_v9, %v1821_v30 }
 0x2f0   :  { %v986_v14 = vmul.f32 %v1469_v9, %v1823_v34  ;;  %v987_v28 = vmul.f32 %v1469_v9, %v1825_v63  ;;  %v988_v50 = vmul.f32 %v1469_v9, %v1827_v35  ;;  %v989_v55 = vmul.f32 %v1469_v9, %v1829_v44 }
 0x2f1   :  { %1108 = vst [vmem:[#allocation8 + $0xe8] sm:$0xff] %v1076_v17  ;;  %v990_v27 = vmul.f32 %v1469_v9, %v1831_v52  ;;  %v991_v41 = vmul.f32 %v1469_v9, %v1833_v49  ;;  %v992_v32 = vmul.f32 %v1469_v9, %v1835_v46  ;;  %v993_v11 = vmul.f32 %v1469_v9, %v1837_v37 }
 0x2f2   :  { %v994_v51 = vmul.f32 %v1469_v9, %v1839_v36  ;;  %v995_v30 = vmul.f32 %v1469_v9, %v1841_v42  ;;  %v996_v34 = vmul.f32 %v1469_v9, %v1843_v53  ;;  %v997_v63 = vmul.f32 %v1469_v9, %v1845_v31 }
 0x2f3   :  { %v999_v35 = vmul.f32 %v1469_v9, %v1849_v0  ;;  %v1000_v44 = vmul.f32 %v1469_v9, %v1851_v6  ;;  %v1008_v52 = vmul.f32 %v1984_v15, %v969_v16  ;;  %v1009_v49 = vmul.f32 %v1984_v15, %v970_v54 }
 0x2f4   :  { %v1010_v46 = vmul.f32 %v1984_v15, %v971_v18  ;;  %v1011_v37 = vmul.f32 %v1984_v15, %v972_v33  ;;  %v1012_v36 = vmul.f32 %v1984_v15, %v973_v23  ;;  %v1013_v42 = vmul.f32 %v1984_v15, %v974_v25 }
 0x2f5   :  { %v1014_v53 = vmul.f32 %v1984_v15, %v975_v58  ;;  %v1015_v31 = vmul.f32 %v1984_v15, %v976_v29  ;;  %v1016_v0 = vmul.f32 %v1984_v15, %v977_v39  ;;  %v1017_v6 = vmul.f32 %v1984_v15, %v978_v40 }
 0x2f6   :  { %v1018_v20 = vmul.f32 %v1984_v15, %v979_v26  ;;  %v1019_v24 = vmul.f32 %v1984_v15, %v980_v4  ;;  %v1020_v38 = vmul.f32 %v1984_v15, %v981_v12  ;;  %v1021_v45 = vmul.f32 %v1984_v15, %v982_v5 }
 0x2f7   :  { %v1022_v3 = vmul.f32 %v1984_v15, %v983_v56  ;;  %v1023_v13 = vmul.f32 %v1984_v15, %v984_v7  ;;  %v1024_v43 = vmul.f32 %v1984_v15, %v985_v60  ;;  %v1025_v19 = vmul.f32 %v1984_v15, %v986_v14 }
 0x2f8   :  { %v1026_v47 = vmul.f32 %v1984_v15, %v987_v28  ;;  %v1027_v57 = vmul.f32 %v1984_v15, %v988_v50  ;;  %v1028_v48 = vmul.f32 %v1984_v15, %v989_v55  ;;  %v1029_v21 = vmul.f32 %v1984_v15, %v990_v27 }
 0x2f9   :  { %v1030_v59 = vmul.f32 %v1984_v15, %v991_v41  ;;  %v1031_v61 = vmul.f32 %v1984_v15, %v992_v32  ;;  %v1032_v1 = vmul.f32 %v1984_v15, %v993_v11  ;;  %v1033_v2 = vmul.f32 %v1984_v15, %v994_v51 }
 0x2fa   :  { %v1034_v8 = vmul.f32 %v1984_v15, %v995_v30  ;;  %v1035_v9 = vmul.f32 %v1984_v15, %v996_v34  ;;  %v1036_v10 = vmul.f32 %v1984_v15, %v997_v63  ;;  %v1038_v16 = vmul.f32 %v1984_v15, %v999_v35 }
 0x2fb   :  { %v1039_v54 = vmul.f32 %v1984_v15, %v1000_v44  ;;  %v1047_v18 = vadd.f32 %v1993_v22, %v1008_v52  ;;  %v1048_v33 = vadd.f32 %v1993_v22, %v1009_v49  ;;  %v1049_v23 = vadd.f32 %v1993_v22, %v1010_v46 }
 0x2fc   :  { %v1050_v25 = vadd.f32 %v1993_v22, %v1011_v37  ;;  %v1051_v58 = vadd.f32 %v1993_v22, %v1012_v36  ;;  %v1052_v62 = vadd.f32 %v1993_v22, %v1013_v42  ;;  %v1053_v29 = vadd.f32 %v1993_v22, %v1014_v53 }
 0x2fd   :  { %v1054_v39 = vadd.f32 %v1993_v22, %v1015_v31  ;;  %v1055_v40 = vadd.f32 %v1993_v22, %v1016_v0  ;;  %v1056_v15 = vadd.f32 %v1993_v22, %v1017_v6  ;;  %v1057_v26 = vadd.f32 %v1993_v22, %v1018_v20  ;;  %1079 = vst [vmem:[#allocation8] sm:$0xff] %v1047_v18 }
 0x2fe   :  { %1080 = vst [vmem:[#allocation8 + $0x8] sm:$0xff] %v1048_v33  ;;  %1081 = vst [vmem:[#allocation8 + $0x10] sm:$0xff] %v1049_v23  ;;  %v1058_v4 = vadd.f32 %v1993_v22, %v1019_v24  ;;  %v1059_v12 = vadd.f32 %v1993_v22, %v1020_v38  ;;  %v1060_v5 = vadd.f32 %v1993_v22, %v1021_v45 }
 0x2ff   :  { %v1061_v17 = vadd.f32 %v1993_v22, %v1022_v3  ;;  %1082 = vst [vmem:[#allocation8 + $0x18] sm:$0xff] %v1050_v25  ;;  %1083 = vst [vmem:[#allocation8 + $0x20] sm:$0xff] %v1051_v58  ;;  %v1062_v56 = vadd.f32 %v1993_v22, %v1023_v13  ;;  %v1063_v7 = vadd.f32 %v1993_v22, %v1024_v43 }
 0x300   :  { %1084 = vst [vmem:[#allocation8 + $0x28] sm:$0xff] %v1052_v62  ;;  %1085 = vst [vmem:[#allocation8 + $0x30] sm:$0xff] %v1053_v29  ;;  %v1064_v60 = vadd.f32 %v1993_v22, %v1025_v19  ;;  %v1065_v14 = vadd.f32 %v1993_v22, %v1026_v47  ;;  %v1066_v28 = vadd.f32 %v1993_v22, %v1027_v57 }
 0x301   :  { %1086 = vst [vmem:[#allocation8 + $0x38] sm:$0xff] %v1054_v39  ;;  %1087 = vst [vmem:[#allocation8 + $0x40] sm:$0xff] %v1055_v40  ;;  %v1067_v50 = vadd.f32 %v1993_v22, %v1028_v48  ;;  %v1068_v55 = vadd.f32 %v1993_v22, %v1029_v21  ;;  %v1069_v27 = vadd.f32 %v1993_v22, %v1030_v59 }
 0x302   :  { %1088 = vst [vmem:[#allocation8 + $0x48] sm:$0xff] %v1056_v15  ;;  %1089 = vst [vmem:[#allocation8 + $0x50] sm:$0xff] %v1057_v26  ;;  %v1070_v41 = vadd.f32 %v1993_v22, %v1031_v61  ;;  %v1071_v32 = vadd.f32 %v1993_v22, %v1032_v1  ;;  %v1072_v11 = vadd.f32 %v1993_v22, %v1033_v2 }
 0x303   :  { %1090 = vst [vmem:[#allocation8 + $0x58] sm:$0xff] %v1058_v4  ;;  %1091 = vst [vmem:[#allocation8 + $0x60] sm:$0xff] %v1059_v12  ;;  %v1073_v51 = vadd.f32 %v1993_v22, %v1034_v8  ;;  %v1074_v30 = vadd.f32 %v1993_v22, %v1035_v9  ;;  %v1075_v34 = vadd.f32 %v1993_v22, %v1036_v10 }
 0x304   :  { %1092 = vst [vmem:[#allocation8 + $0x68] sm:$0xff] %v1060_v5  ;;  %1093 = vst [vmem:[#allocation8 + $0x70] sm:$0xff] %v1061_v17  ;;  %v1077_v63 = vadd.f32 %v1993_v22, %v1038_v16  ;;  %v1078_v35 = vadd.f32 %v1993_v22, %v1039_v54 }
 0x305   :  { %1094 = vst [vmem:[#allocation8 + $0x78] sm:$0xff] %v1062_v56  ;;  %1095 = vst [vmem:[#allocation8 + $0x80] sm:$0xff] %v1063_v7 }
 0x306   :  { %1096 = vst [vmem:[#allocation8 + $0x88] sm:$0xff] %v1064_v60  ;;  %1097 = vst [vmem:[#allocation8 + $0x90] sm:$0xff] %v1065_v14 }
 0x307   :  { %1098 = vst [vmem:[#allocation8 + $0x98] sm:$0xff] %v1066_v28  ;;  %1099 = vst [vmem:[#allocation8 + $0xa0] sm:$0xff] %v1067_v50 }
 0x308   :  { %1100 = vst [vmem:[#allocation8 + $0xa8] sm:$0xff] %v1068_v55  ;;  %1101 = vst [vmem:[#allocation8 + $0xb0] sm:$0xff] %v1069_v27 }
 0x309   :  { %1102 = vst [vmem:[#allocation8 + $0xb8] sm:$0xff] %v1070_v41  ;;  %1103 = vst [vmem:[#allocation8 + $0xc0] sm:$0xff] %v1071_v32 }
 0x30a   :  { %1104 = vst [vmem:[#allocation8 + $0xc8] sm:$0xff] %v1072_v11  ;;  %1105 = vst [vmem:[#allocation8 + $0xd0] sm:$0xff] %v1073_v51 }
 0x30b   :  { %1106 = vst [vmem:[#allocation8 + $0xd8] sm:$0xff] %v1074_v30  ;;  %1107 = vst [vmem:[#allocation8 + $0xe0] sm:$0xff] %v1075_v34 }
 0x30c   :  { %1109 = vst [vmem:[#allocation8 + $0xf0] sm:$0xff] %v1077_v63  ;;  %1110 = vst [vmem:[#allocation8 + $0xf8] sm:$0xff] %v1078_v35 }
 0x30d   :  { %1547 = shalt.err (!%p1544_p0)
}
 0x30e   :  { %s1548_s18 = scalar_lea.hbm %s2108_s6, 4096 }
 0x30f   :  { %p1549_p1 = scmp.ne.s32.totalorder %s2108_s6, %s1548_s18  ;;  %p1552_p2 = scmp.lt.u32.totalorder %s1548_s18, %s2108_s6 }
 0x311   :  { %p1554_p3 = pnand %p1552_p2, %p1549_p1 }
 0x313   :  { %1557 = shalt.err (!%p1554_p3)
}
 0x314   :  { %1122 = dma.vmem_to_hbm [thread:$0]  %s1117_s5, 4096, %s2108_s6, [#allocation4], %s1568_s1, %s1568_s1, %s1569_s21  }
 0x315   :  { %1562 = dma.done.wait [#allocation4], 4096  }
 0x316   :  { %1563 = vsyncadd [#allocation4], 4294963200 }
 0x317   :  { %1126 = vsyncpa [#allocation3], 1 }
 0x318   :  { %1127 = vsyncpa [#allocation6], 1 }
 0x319   :  { %1128 = vsyncpa [#allocation4], 1 }

</bundles_post_ra>
